<compile_context>
chip_gen: v7x
topology: tpu7x:2x2x1
jax: 0.10.0
libtpu: 0.0.40
codegen_flags: <defaults>
</compile_context>

<pallas_src>
import functools

import jax
import jax.numpy as jnp
from jax.experimental import pallas as pl
from jax.experimental.pallas import tpu as pltpu


def _round_up(x, m):
    return ((x + m - 1) // m) * m


# ----------------------------- Pallas kernel --------------------------------

def _ibf_comm_kernel(x_ref, w1_ref, b1_ref, w2_ref, b2_ref, w3_ref, b3_ref,
                     mu_ref, *, n_chunks):
    """mu = fc3(relu(fc2(relu(fc1(x))))) for one batch tile.

    The tile is split into `n_chunks` statically-unrolled sub-chunks so the
    scheduler has independent work to hide MXU result-FIFO drain between the
    three dependent matmuls.
    """
    # Weights (bf16) and biases (f32) are VMEM-resident; load once per step.
    w1 = w1_ref[...]
    w2 = w2_ref[...]
    w3 = w3_ref[...]

    tb = x_ref.shape[0]
    chunk = tb // n_chunks           # multiple of 8 by construction
    hid = w1.shape[1]
    out = w3.shape[1]

    # Hoist bias broadcasts out of the unrolled loop (no CSE of broadcasts).
    b1 = jnp.broadcast_to(b1_ref[...], (chunk, hid))
    b2 = jnp.broadcast_to(b2_ref[...], (chunk, hid))
    b3 = jnp.broadcast_to(b3_ref[...], (chunk, out))

    for c in range(n_chunks):        # static unroll
        lo = c * chunk               # static, sublane-aligned offset

        x = x_ref[pl.ds(lo, chunk), :].astype(jnp.bfloat16)

        # fc1 + ReLU (bf16 MXU operands, f32 accumulate + elementwise)
        h1 = jnp.dot(x, w1, preferred_element_type=jnp.float32)
        h1 = jnp.maximum(h1 + b1, 0.0)

        # fc2 + ReLU
        h2 = jnp.dot(h1.astype(jnp.bfloat16), w2,
                     preferred_element_type=jnp.float32)
        h2 = jnp.maximum(h2 + b2, 0.0)

        # fc3 -> mu (unpadded last dim: masked store, ~10x fewer HBM bytes
        # than a 128-lane padded writeback)
        mu = jnp.dot(h2.astype(jnp.bfloat16), w3,
                     preferred_element_type=jnp.float32)
        mu_ref[pl.ds(lo, chunk), :] = (mu + b3).astype(mu_ref.dtype)


# ------------------------ one-time param preparation -------------------------

def prepare_params(torch_params):
    """Convert PyTorch-convention params ((out,in) weights, (out,) biases)
    to kernel layout ONCE: transpose to (in,out) and cast weights to bf16
    (MXU operands); biases stay f32 as (1,out) rows."""
    return {
        "w1": torch_params["fc1_w"].T.astype(jnp.bfloat16),
        "b1": torch_params["fc1_b"][None, :].astype(jnp.float32),
        "w2": torch_params["fc2_w"].T.astype(jnp.bfloat16),
        "b2": torch_params["fc2_b"][None, :].astype(jnp.float32),
        "w3": torch_params["fc3_w"].T.astype(jnp.bfloat16),
        "b3": torch_params["fc3_b"][None, :].astype(jnp.float32),
    }


# ------------------------------ JAX wrapper ----------------------------------

def _choose_batch_tile(B, batch_tile):
    """Large tiles amortize per-grid-step overhead; but always give the grid
    >= 2 steps when B > 8 so v7x's two TensorCores both get work."""
    if B <= 8:
        return B
    half = _round_up(-(-B // 2), 8)          # round_up(ceil(B/2), 8)
    return max(8, min(batch_tile, half))


def ibf_comm_forward(inputs, kp, *, batch_tile=512):
    """inputs: (B, input_shape) f32; kp: kernel-layout params from
    prepare_params().  Returns (mu, sigma) like the PyTorch module."""
    B, in_dim = inputs.shape
    hid = kp["w1"].shape[1]
    out_dim = kp["w3"].shape[1]

    tb = _choose_batch_tile(B, batch_tile)
    grid = (pl.cdiv(B, tb),)
    # 2 sub-chunks (>= 8 rows each) hide MXU result-pop latency between the
    # dependent matmuls; fall back to 1 for tiny tiles.
    n_chunks = 2 if (tb >= 16 and tb % 16 == 0) else 1

    # Advisory cost estimate so XLA can schedule around the custom call.
    flops = 2 * B * (in_dim * hid + hid * hid + hid * out_dim)
    bytes_accessed = (4 * B * in_dim + 4 * B * out_dim
                      + 2 * (in_dim * hid + hid * hid + hid * out_dim)
                      + 4 * (hid + hid + out_dim))
    cost = pl.CostEstimate(flops=flops, transcendentals=0,
                           bytes_accessed=bytes_accessed)

    def resident(shape):
        # Weights/biases: same block every grid step -> stay VMEM-resident.
        return pl.BlockSpec(shape, lambda i: (0, 0))

    mu = pl.pallas_call(
        functools.partial(_ibf_comm_kernel, n_chunks=n_chunks),
        out_shape=jax.ShapeDtypeStruct((B, out_dim), jnp.float32),
        grid=grid,
        in_specs=[
            pl.BlockSpec((tb, in_dim), lambda i: (i, 0)),
            resident(kp["w1"].shape), resident(kp["b1"].shape),
            resident(kp["w2"].shape), resident(kp["b2"].shape),
            resident(kp["w3"].shape), resident(kp["b3"].shape),
        ],
        out_specs=pl.BlockSpec((tb, out_dim), lambda i: (i, 0)),
        compiler_params=pltpu.CompilerParams(
            dimension_semantics=("parallel",)),
        cost_estimate=cost,
    )(inputs, kp["w1"], kp["b1"], kp["w2"], kp["b2"], kp["w3"], kp["b3"])

    # sigma is a constant; no reason to burn an output DMA on it in-kernel.
    sigma = jnp.ones_like(mu)
    return mu, sigma


# ------------------------ deterministic parameter init -----------------------

def init_params(key, input_shape, rnn_hidden_dim, comm_embed_dim, n_agents):
    """Deterministic synthetic init mimicking nn.Linear shapes
    (PyTorch convention: weight (out, in), bias (out,))."""
    out3 = comm_embed_dim * n_agents
    ks = jax.random.split(key, 6)

    def lin(kw, kb, fan_in, fan_out):
        bound = 1.0 / jnp.sqrt(fan_in)
        w = jax.random.uniform(kw, (fan_out, fan_in), jnp.float32, -bound, bound)
        b = jax.random.uniform(kb, (fan_out,), jnp.float32, -bound, bound)
        return w, b

    fc1_w, fc1_b = lin(ks[0], ks[1], input_shape, rnn_hidden_dim)
    fc2_w, fc2_b = lin(ks[2], ks[3], rnn_hidden_dim, rnn_hidden_dim)
    fc3_w, fc3_b = lin(ks[4], ks[5], rnn_hidden_dim, out3)
    return {
        "fc1_w": fc1_w, "fc1_b": fc1_b,
        "fc2_w": fc2_w, "fc2_b": fc2_b,
        "fc3_w": fc3_w, "fc3_b": fc3_b,
    }


def reference_forward(inputs, params):
    """Pure-JAX f32 reference (mirrors the PyTorch forward)."""
    h1 = jax.nn.relu(inputs @ params["fc1_w"].T + params["fc1_b"])
    h2 = jax.nn.relu(h1 @ params["fc2_w"].T + params["fc2_b"])
    mu = h2 @ params["fc3_w"].T + params["fc3_b"]
    sigma = jnp.ones_like(mu)
    return mu, sigma


# ---------------------------------- main --------------------------------------

if __name__ == "__main__":
    # Small shapes consistent with the module's args.
    batch = 128               # agents x timesteps flattened
    input_shape = 32          # per-agent input feature dim
    rnn_hidden_dim = 32
    comm_embed_dim = 4
    n_agents = 3              # mu dim = comm_embed_dim * n_agents = 12

    key = jax.random.PRNGKey(0)
    k_params, k_x = jax.random.split(key)

    torch_params = init_params(k_params, input_shape, rnn_hidden_dim,
                               comm_embed_dim, n_agents)
    kparams = prepare_params(torch_params)      # transpose + bf16 cast ONCE
    x = jax.random.normal(k_x, (batch, input_shape), jnp.float32)

    forward = jax.jit(ibf_comm_forward)
    mu, sigma = forward(x, kparams)
    jax.block_until_ready((mu, sigma))

    mu_ref, sigma_ref = reference_forward(x, torch_params)
    assert mu.shape == (batch, comm_embed_dim * n_agents)
    assert sigma.shape == mu.shape
    # bf16 MXU operands -> loosened tolerance vs. the f32 reference.
    assert jnp.allclose(mu, mu_ref, atol=3e-2, rtol=3e-2)
    assert jnp.all(sigma == 1.0)

    print("KERNEL_OK")
</pallas_src>

<mosaic_0001>
module attributes {stable_mosaic.version = 11 : i64} {
  func.func @_ibf_comm_kernel(%arg0: i32, %arg1: memref<64x32xf32, #tpu.memory_space<vmem>>, %arg2: memref<32x32xbf16, #tpu.memory_space<vmem>>, %arg3: memref<1x32xf32, #tpu.memory_space<vmem>>, %arg4: memref<32x32xbf16, #tpu.memory_space<vmem>>, %arg5: memref<1x32xf32, #tpu.memory_space<vmem>>, %arg6: memref<32x12xbf16, #tpu.memory_space<vmem>>, %arg7: memref<1x12xf32, #tpu.memory_space<vmem>>, %arg8: memref<64x12xf32, #tpu.memory_space<vmem>>) attributes {dimension_semantics = [#tpu.dimension_semantics<parallel>], iteration_bounds = array<i64: 2>, scalar_prefetch = 0 : i64, scratch_operands = 0 : i64, tpu.core_type = #tpu.core_type<tc>, window_params = [{transform_indices = @transform_0, window_bounds = array<i64: 64, 32>}, {pipeline_mode = #tpu.pipeline_mode<synchronous>, transform_indices = @transform_1, window_bounds = array<i64: 32, 32>}, {pipeline_mode = #tpu.pipeline_mode<synchronous>, transform_indices = @transform_2, window_bounds = array<i64: 1, 32>}, {pipeline_mode = #tpu.pipeline_mode<synchronous>, transform_indices = @transform_3, window_bounds = array<i64: 32, 32>}, {pipeline_mode = #tpu.pipeline_mode<synchronous>, transform_indices = @transform_4, window_bounds = array<i64: 1, 32>}, {pipeline_mode = #tpu.pipeline_mode<synchronous>, transform_indices = @transform_5, window_bounds = array<i64: 32, 12>}, {pipeline_mode = #tpu.pipeline_mode<synchronous>, transform_indices = @transform_6, window_bounds = array<i64: 1, 12>}, {transform_indices = @transform_7, window_bounds = array<i64: 64, 12>}]} {
    %c0 = arith.constant 0 : index
    %c0_0 = arith.constant 0 : index
    %0 = vector.load %arg2[%c0, %c0_0] : memref<32x32xbf16, #tpu.memory_space<vmem>>, vector<32x32xbf16>
    %c0_1 = arith.constant 0 : index
    %c0_2 = arith.constant 0 : index
    %1 = vector.load %arg4[%c0_1, %c0_2] : memref<32x32xbf16, #tpu.memory_space<vmem>>, vector<32x32xbf16>
    %c0_3 = arith.constant 0 : index
    %c0_4 = arith.constant 0 : index
    %2 = vector.load %arg6[%c0_3, %c0_4] : memref<32x12xbf16, #tpu.memory_space<vmem>>, vector<32x12xbf16>
    %c0_5 = arith.constant 0 : index
    %c0_6 = arith.constant 0 : index
    %3 = vector.load %arg3[%c0_5, %c0_6] : memref<1x32xf32, #tpu.memory_space<vmem>>, vector<1x32xf32>
    %4 = vector.shape_cast %3 : vector<1x32xf32> to vector<1x32xf32>
    %5 = vector.broadcast %4 : vector<1x32xf32> to vector<32x32xf32>
    %c0_7 = arith.constant 0 : index
    %c0_8 = arith.constant 0 : index
    %6 = vector.load %arg5[%c0_7, %c0_8] : memref<1x32xf32, #tpu.memory_space<vmem>>, vector<1x32xf32>
    %7 = vector.shape_cast %6 : vector<1x32xf32> to vector<1x32xf32>
    %8 = vector.broadcast %7 : vector<1x32xf32> to vector<32x32xf32>
    %c0_9 = arith.constant 0 : index
    %c0_10 = arith.constant 0 : index
    %9 = vector.load %arg7[%c0_9, %c0_10] : memref<1x12xf32, #tpu.memory_space<vmem>>, vector<1x12xf32>
    %10 = vector.shape_cast %9 : vector<1x12xf32> to vector<1x12xf32>
    %11 = vector.broadcast %10 : vector<1x12xf32> to vector<32x12xf32>
    %c0_11 = arith.constant 0 : index
    %c0_12 = arith.constant 0 : index
    %12 = vector.load %arg1[%c0_11, %c0_12] : memref<64x32xf32, #tpu.memory_space<vmem>>, vector<32x32xf32>
    %13 = arith.truncf %12 : vector<32x32xf32> to vector<32x32xbf16>
    %cst = arith.constant dense<0.000000e+00> : vector<32x32xf32>
    %14 = tpu.matmul %13, %0, %cst {dimension_numbers = #tpu.dot_dimension_numbers<[1], [0], [0], [1], [0, 0, 1, 1], [], []>} : vector<32x32xbf16>, vector<32x32xbf16>, vector<32x32xf32> -> vector<32x32xf32>
    %15 = arith.addf %14, %5 : vector<32x32xf32>
    %cst_13 = arith.constant 0.000000e+00 : f32
    %16 = vector.broadcast %cst_13 : f32 to vector<32x32xf32>
    %17 = arith.maximumf %15, %16 : vector<32x32xf32>
    %18 = arith.truncf %17 : vector<32x32xf32> to vector<32x32xbf16>
    %cst_14 = arith.constant dense<0.000000e+00> : vector<32x32xf32>
    %19 = tpu.matmul %18, %1, %cst_14 {dimension_numbers = #tpu.dot_dimension_numbers<[1], [0], [0], [1], [0, 0, 1, 1], [], []>} : vector<32x32xbf16>, vector<32x32xbf16>, vector<32x32xf32> -> vector<32x32xf32>
    %20 = arith.addf %19, %8 : vector<32x32xf32>
    %cst_15 = arith.constant 0.000000e+00 : f32
    %21 = vector.broadcast %cst_15 : f32 to vector<32x32xf32>
    %22 = arith.maximumf %20, %21 : vector<32x32xf32>
    %23 = arith.truncf %22 : vector<32x32xf32> to vector<32x32xbf16>
    %cst_16 = arith.constant dense<0.000000e+00> : vector<32x12xf32>
    %24 = tpu.matmul %23, %2, %cst_16 {dimension_numbers = #tpu.dot_dimension_numbers<[1], [0], [0], [1], [0, 0, 1, 1], [], []>} : vector<32x32xbf16>, vector<32x12xbf16>, vector<32x12xf32> -> vector<32x12xf32>
    %25 = arith.addf %24, %11 : vector<32x12xf32>
    %c0_17 = arith.constant 0 : index
    %c0_18 = arith.constant 0 : index
    %26 = vector.load %arg8[%c0_17, %c0_18] : memref<64x12xf32, #tpu.memory_space<vmem>>, vector<32x12xf32>
    tpu.vector_store %arg8[%c0_17, %c0_18], %25 {strides = array<i32>} : memref<64x12xf32, #tpu.memory_space<vmem>>, vector<32x12xf32>,
    %c32 = arith.constant 32 : index
    %c0_19 = arith.constant 0 : index
    %27 = vector.load %arg1[%c32, %c0_19] : memref<64x32xf32, #tpu.memory_space<vmem>>, vector<32x32xf32>
    %28 = arith.truncf %27 : vector<32x32xf32> to vector<32x32xbf16>
    %cst_20 = arith.constant dense<0.000000e+00> : vector<32x32xf32>
    %29 = tpu.matmul %28, %0, %cst_20 {dimension_numbers = #tpu.dot_dimension_numbers<[1], [0], [0], [1], [0, 0, 1, 1], [], []>} : vector<32x32xbf16>, vector<32x32xbf16>, vector<32x32xf32> -> vector<32x32xf32>
    %30 = arith.addf %29, %5 : vector<32x32xf32>
    %cst_21 = arith.constant 0.000000e+00 : f32
    %31 = vector.broadcast %cst_21 : f32 to vector<32x32xf32>
    %32 = arith.maximumf %30, %31 : vector<32x32xf32>
    %33 = arith.truncf %32 : vector<32x32xf32> to vector<32x32xbf16>
    %cst_22 = arith.constant dense<0.000000e+00> : vector<32x32xf32>
    %34 = tpu.matmul %33, %1, %cst_22 {dimension_numbers = #tpu.dot_dimension_numbers<[1], [0], [0], [1], [0, 0, 1, 1], [], []>} : vector<32x32xbf16>, vector<32x32xbf16>, vector<32x32xf32> -> vector<32x32xf32>
    %35 = arith.addf %34, %8 : vector<32x32xf32>
    %cst_23 = arith.constant 0.000000e+00 : f32
    %36 = vector.broadcast %cst_23 : f32 to vector<32x32xf32>
    %37 = arith.maximumf %35, %36 : vector<32x32xf32>
    %38 = arith.truncf %37 : vector<32x32xf32> to vector<32x32xbf16>
    %cst_24 = arith.constant dense<0.000000e+00> : vector<32x12xf32>
    %39 = tpu.matmul %38, %2, %cst_24 {dimension_numbers = #tpu.dot_dimension_numbers<[1], [0], [0], [1], [0, 0, 1, 1], [], []>} : vector<32x32xbf16>, vector<32x12xbf16>, vector<32x12xf32> -> vector<32x12xf32>
    %40 = arith.addf %39, %11 : vector<32x12xf32>
    %c32_25 = arith.constant 32 : index
    %c0_26 = arith.constant 0 : index
    %41 = vector.load %arg8[%c32_25, %c0_26] : memref<64x12xf32, #tpu.memory_space<vmem>>, vector<32x12xf32>
    tpu.vector_store %arg8[%c32_25, %c0_26], %40 {strides = array<i32>} : memref<64x12xf32, #tpu.memory_space<vmem>>, vector<32x12xf32>,
    return
  }
  func.func @transform_0(%arg0: i32) -> (i32, i32) {
    %c0_i32 = arith.constant 0 : i32
    %c0_i32_0 = arith.constant 0 : i32
    return %arg0, %c0_i32 : i32, i32
  }
  func.func @transform_1(%arg0: i32) -> (i32, i32) {
    %c0_i32 = arith.constant 0 : i32
    %c0_i32_0 = arith.constant 0 : i32
    %c0_i32_1 = arith.constant 0 : i32
    return %c0_i32, %c0_i32_0 : i32, i32
  }
  func.func @transform_2(%arg0: i32) -> (i32, i32) {
    %c0_i32 = arith.constant 0 : i32
    %c0_i32_0 = arith.constant 0 : i32
    %c0_i32_1 = arith.constant 0 : i32
    return %c0_i32, %c0_i32_0 : i32, i32
  }
  func.func @transform_3(%arg0: i32) -> (i32, i32) {
    %c0_i32 = arith.constant 0 : i32
    %c0_i32_0 = arith.constant 0 : i32
    %c0_i32_1 = arith.constant 0 : i32
    return %c0_i32, %c0_i32_0 : i32, i32
  }
  func.func @transform_4(%arg0: i32) -> (i32, i32) {
    %c0_i32 = arith.constant 0 : i32
    %c0_i32_0 = arith.constant 0 : i32
    %c0_i32_1 = arith.constant 0 : i32
    return %c0_i32, %c0_i32_0 : i32, i32
  }
  func.func @transform_5(%arg0: i32) -> (i32, i32) {
    %c0_i32 = arith.constant 0 : i32
    %c0_i32_0 = arith.constant 0 : i32
    %c0_i32_1 = arith.constant 0 : i32
    return %c0_i32, %c0_i32_0 : i32, i32
  }
  func.func @transform_6(%arg0: i32) -> (i32, i32) {
    %c0_i32 = arith.constant 0 : i32
    %c0_i32_0 = arith.constant 0 : i32
    %c0_i32_1 = arith.constant 0 : i32
    return %c0_i32, %c0_i32_0 : i32, i32
  }
  func.func @transform_7(%arg0: i32) -> (i32, i32) {
    %c0_i32 = arith.constant 0 : i32
    %c0_i32_0 = arith.constant 0 : i32
    return %arg0, %c0_i32 : i32, i32
  }
}

</mosaic_0001>

<bundles_post_ra>
// kernel: ibf_comm_forward.1
= control target key start
LH: loop header
LB: loop body
LE: loop exit
PB: predicated region body
PF: predicated region fallthrough
CT: control target
= control target key end

     0   :  { %s950_s24 = smov 0   ;;  %s1063_s0 = inlined_call_operand.vmem [shape: f32[128,32], index: 0, kind: input, shape index: {}]   ;;  %s1064_s1 = inlined_call_operand.vmem [shape: bf16[32,32], index: 1, kind: input, shape index: {}]   ;;  %s1065_s2 = inlined_call_operand.vmem [shape: f32[1,32], index: 2, kind: input, shape index: {}]   ;;  %s1066_s3 = inlined_call_operand.vmem [shape: bf16[32,32], index: 3, kind: input, shape index: {}]   ;;  %s1067_s4 = inlined_call_operand.vmem [shape: f32[1,32], index: 4, kind: input, shape index: {}]   ;;  %s1068_s5 = inlined_call_operand.vmem [shape: bf16[32,12], index: 5, kind: input, shape index: {}]   ;;  %s1069_s6 = inlined_call_operand.vmem [shape: f32[1,12], index: 6, kind: input, shape index: {}]   ;;  %s1070_s7 = inlined_call_operand.vmem [shape: f32[128,12], index: 7, kind: output, shape index: {}]  }
   0x1 LB: > { %s784_s25 = sadd.s32 4294967295, %s908_s24   ;;  %p788_p0 = scmp.ge.s32.totalorder %s908_s24, 1  ;;  %s908_s24 = sphi %s950_s24, %s17_s24  }
   0x2   : > { %p238_p1 = scmp.lt.s32.totalorder %s908_s24, 3 }
   0x4   : > { %p239_p2 = pnand %p788_p0, %p238_p1 }
   0x5   : > { %v896_v0 = vld [vmem:[%s1064_s1] sm:$0xff] (!%p239_p2)   ;;  %s789_s28 = sshll.u32 (!%p239_p2), %s784_s25, 3  ;;  %v897_v1 = vld [vmem:[%s1064_s1 + $0x8] sm:$0xff] (!%p239_p2)   ;;  %vm334_vm0 = vcmask (!%p239_p2), 261120   ;;  %vm536_vm1 = vcmask (!%p239_p2), 97280  }
   0x6   : > { %242 = sbr.rel (%p239_p2) target bundleno = 912 (0x390), region = 48  ;;  %p271_p3 = scmp.lt.s32.totalorder (!%p239_p2), %s789_s28, 15  ;;  %840 = vmatprep.subr.bf16.mxu0 (!%p239_p2), %v896_v0  ;;  %v983_v8 = vld [vmem:[%s1066_s3] sm:$0xff] (!%p239_p2)   ;;  %v990_v9 = vld [vmem:[%s1066_s3 + $0x8] sm:$0xff] (!%p239_p2)  }
   0x7   : > { %841 = vmatpush3.bf16.msra.mxu0 (!%p239_p2), %v896_v0  ;;  %848 = vmatprep.subr.bf16.mxu1 (!%p239_p2), %v983_v8  ;;  %v997_v10 = vld [vmem:[%s1065_s2] ss:$0 sm:$0xff] (!%p239_p2)  ;;  %v901_v32 = vld [vmem:[%s1068_s5 + $0x8] sm:$0xff] (!%p239_p2)  }
   0x8   : > { %842 = vmatprep.subr.bf16.mxu0 (!%p239_p2), %v897_v1  ;;  %849 = vmatpush3.bf16.msra.mxu1 (!%p239_p2), %v983_v8  ;;  %v900_v31 = vld [vmem:[%s1068_s5] sm:$0xff] (!%p239_p2)  }
   0x9   : > { %850 = vmatprep.subr.bf16.mxu1 (!%p239_p2), %v990_v9  ;;  %v794_v33 = vld [vmem:[%s1067_s4] ss:$0 sm:$0xff] (!%p239_p2) }
   0xa   : > { %v795_v62 = vld [vmem:[%s1069_s6] ss:$0 sm:$0xff] (!%p239_p2) }
   0xb   : > { %843 = vmatpush3.bf16.msra.mxu0 (!%p239_p2), %v897_v1 }
   0xc   : > { %851 = vmatpush3.bf16.msra.mxu1 (!%p239_p2), %v990_v9  ;;  %856 = vmatprep.subr.bf16.mxu0 (!%p239_p2), %v900_v31 }
   0xd   : > { %s1072_s28 = smov (!%p271_p3, %s789_s28), 15  ;;  %864 = vmatprep.subr.bf16.mxu1 %v896_v0 }
   0xe   : > { %s790_s8 = sshll.u32 %s1072_s28, 3 }
   0xf   : > { %s972_s11 = scalar_lea.vmem %s1063_s0, %s790_s8  ;;  %s1040_s30 = scalar_lea.vmem %s1070_s7, %s790_s8 }
  0x10   : > { %v316_v2 = vld [vmem:[%s972_s11] sm:$0xff]  ;;  %v317_v3 = vld [vmem:[%s972_s11 + $0x8] sm:$0xff]  ;;  %v318_v4 = vld [vmem:[%s972_s11 + $0x10] sm:$0xff] }
  0x11   : > { %v320_v5 = vpack.c.bf16 %v317_v3, %v316_v2  ;;  %v319_v6 = vld [vmem:[%s972_s11 + $0x18] sm:$0xff]  ;;  %v541_v21 = vld [vmem:[%s972_s11 + $0x20] sm:$0xff]  ;;  %v542_v22 = vld [vmem:[%s972_s11 + $0x28] sm:$0xff] }
  0x12   : > { %v321_v7 = vpack.c.bf16 %v319_v6, %v318_v4  ;;  %v545_v27 = vpack.c.bf16 %v542_v22, %v541_v21  ;;  %v543_v28 = vld [vmem:[%s972_s11 + $0x30] sm:$0xff]  ;;  %v544_v29 = vld [vmem:[%s972_s11 + $0x38] sm:$0xff] }
  0x13   : > { %844 = vmatprep.mubr.msk.bf16.mxu0 %vm334_vm0, %v320_v5  ;;  %v546_v30 = vpack.c.bf16 %v544_v29, %v543_v28 }
  0x14   : > { %845 = vmatmul.mubr.msk.bf16.vlgmr.msra.gmra.mrb[0].mxu0 %vm334_vm0, %v321_v7 }
  0x15   : > { %857 = vmatpush3.bf16.msra.mxu0 %v900_v31 }
  0x16   : > { %858 = vmatprep.subr.bf16.mxu0 %v901_v32 }
  0x19   : > { %859 = vmatpush3.bf16.msra.mxu0 %v901_v32 }
  0x1a   : > { %872 = vmatprep.subr.bf16.mxu0 %v983_v8 }
  0xe7   : > { %v846_v11 = vpop.f32.mrb[0].mxu0 }
  0xe8   : > { %v384_v12 = vadd.f32 %v846_v11, %v997_v10  ;;  %v375_v13 = vpop.f32.mrb[1].mxu0 }
  0xe9   : > { %v376_v14 = vadd.f32 %v997_v10, %v375_v13  ;;  %v847_v15 = vpop.f32.mrb[2].mxu0 }
  0xea   : > { %v387_v16 = vadd.f32 %v847_v15, %v997_v10  ;;  %v378_v17 = vpop.f32.mrb[3].mxu0  ;;  %v392_v19 = vmax.f32 %v384_v12, 0.0 }
  0xeb   : > { %v379_v18 = vadd.f32 %v997_v10, %v378_v17  ;;  %v390_v23 = vmax.f32 %v376_v14, 0.0 }
  0xec   : > { %v393_v20 = vmax.f32 %v387_v16, 0.0 }
  0xed   : > { %v391_v24 = vmax.f32 %v379_v18, 0.0 }
  0xee   : > { %v395_v25 = vpack.c.bf16 %v393_v20, %v392_v19 }
  0xef   : > { %v394_v26 = vpack.c.bf16 %v391_v24, %v390_v23 }
  0xf1   : > { %852 = vmatprep.mubr.msk.bf16.mxu1 %vm334_vm0, %v394_v26 }
  0xf2   : > { %853 = vmatmul.mubr.msk.bf16.vlgmr.msra.gmra.mrb[0].mxu1 %vm334_vm0, %v395_v25 }
  0xf3   : > { %865 = vmatpush3.bf16.msra.mxu1 %v896_v0  ;;  %868 = vmatprep.mubr.msk.bf16.mxu1 %vm334_vm0, %v545_v27 }
  0xf4   : > { %866 = vmatprep.subr.bf16.mxu1 %v897_v1 }
  0xf7   : > { %867 = vmatpush3.bf16.msra.mxu1 %v897_v1 }
  0xf8   : > { %880 = vmatprep.subr.bf16.mxu1 %v900_v31 }
  0xfa   : > { %869 = vmatmul.mubr.msk.bf16.vlgmr.msra.gmra.mrb[4].mxu1 %vm334_vm0, %v546_v30 }
  0xfb   : > { %881 = vmatpush3.bf16.msra.mxu1 %v900_v31 }
  0xfc   : > { %882 = vmatprep.subr.bf16.mxu1 %v901_v32 }
  0xff   : > { %883 = vmatpush3.bf16.msra.mxu1 %v901_v32 }
 0x1c5   : > { %v854_v34 = vpop.f32.mrb[0].mxu1 }
 0x1c6   : > { %v457_v35 = vadd.f32 %v854_v34, %v794_v33  ;;  %v448_v36 = vpop.f32.mrb[1].mxu1 }
 0x1c7   : > { %v449_v37 = vadd.f32 %v794_v33, %v448_v36  ;;  %v855_v38 = vpop.f32.mrb[2].mxu1 }
 0x1c8   : > { %v460_v39 = vadd.f32 %v855_v38, %v794_v33  ;;  %v451_v40 = vpop.f32.mrb[3].mxu1  ;;  %v465_v42 = vmax.f32 %v457_v35, 0.0 }
 0x1c9   : > { %v452_v41 = vadd.f32 %v794_v33, %v451_v40  ;;  %v463_v44 = vmax.f32 %v449_v37, 0.0 }
 0x1ca   : > { %v466_v43 = vmax.f32 %v460_v39, 0.0 }
 0x1cb   : > { %v464_v45 = vmax.f32 %v452_v41, 0.0 }
 0x1cc   : > { %v468_v46 = vpack.c.bf16 %v466_v43, %v465_v42 }
 0x1cd   : > { %v467_v47 = vpack.c.bf16 %v464_v45, %v463_v44  ;;  %v870_v48 = vpop.f32.mrb[4].mxu1 }
 0x1ce   : > { %v596_v49 = vadd.f32 %v870_v48, %v997_v10  ;;  %v587_v50 = vpop.f32.mrb[5].mxu1 }
 0x1cf   : > { %v588_v51 = vadd.f32 %v997_v10, %v587_v50  ;;  %860 = vmatprep.mubr.msk.bf16.mxu0 %vm334_vm0, %v467_v47  ;;  %v871_v52 = vpop.f32.mrb[6].mxu1 }
 0x1d0   : > { %v599_v53 = vadd.f32 %v871_v52, %v997_v10  ;;  %861 = vmatmul.mubr.msk.bf16.vlgmr.msra.gmra.mrb[4].mxu0 %vm334_vm0, %v468_v46  ;;  %v590_v54 = vpop.f32.mrb[7].mxu1  ;;  %v604_v56 = vmax.f32 %v596_v49, 0.0 }
 0x1d1   : > { %v591_v55 = vadd.f32 %v997_v10, %v590_v54  ;;  %873 = vmatpush3.bf16.msra.mxu0 %v983_v8  ;;  %v602_v58 = vmax.f32 %v588_v51, 0.0 }
 0x1d2   : > { %v605_v57 = vmax.f32 %v599_v53, 0.0  ;;  %874 = vmatprep.subr.bf16.mxu0 %v990_v9 }
 0x1d3   : > { %v603_v59 = vmax.f32 %v591_v55, 0.0 }
 0x1d4   : > { %v607_v60 = vpack.c.bf16 %v605_v57, %v604_v56 }
 0x1d5   : > { %v606_v61 = vpack.c.bf16 %v603_v59, %v602_v58  ;;  %875 = vmatpush3.bf16.msra.mxu0 %v990_v9 }
 0x1d7   : > { %876 = vmatprep.mubr.msk.bf16.mxu0 %vm334_vm0, %v606_v61 }
 0x1d8   : > { %877 = vmatmul.mubr.msk.bf16.vlgmr.msra.gmra.mrb[8].mxu0 %vm334_vm0, %v607_v60 }
 0x2a3   : > { %v862_v63 = vpop.f32.mrb[4].mxu0 }
 0x2a4   : > { %v530_v0 = vadd.f32 %v862_v63, %v795_v62  ;;  %v521_v1 = vpop.f32.mrb[5].mxu0 }
 0x2a5   : > { %v522_v2 = vadd.f32 %v795_v62, %v521_v1  ;;  %v863_v3 = vpop.f32.mrb[6].mxu0 }
 0x2a6   : > { %539 = vst.msk [vmem:[%s1040_s30 + $0x10] sm:$0xff] %vm536_vm1, %v530_v0  ;;  %v533_v4 = vadd.f32 %v863_v3, %v795_v62  ;;  %v524_v5 = vpop.f32.mrb[7].mxu0 }
 0x2a7   : > { %537 = vst.msk [vmem:[%s1040_s30] sm:$0xff] %vm536_vm1, %v522_v2  ;;  %v525_v6 = vadd.f32 %v795_v62, %v524_v5 }
 0x2a8   : > { %540 = vst.msk [vmem:[%s1040_s30 + $0x18] sm:$0xff] %vm536_vm1, %v533_v4 }
 0x2a9   : > { %538 = vst.msk [vmem:[%s1040_s30 + $0x8] sm:$0xff] %vm536_vm1, %v525_v6 }
 0x2ab   : > { %v878_v7 = vpop.f32.mrb[8].mxu0 }
 0x2ac   : > { %v657_v8 = vadd.f32 %v878_v7, %v794_v33  ;;  %v648_v9 = vpop.f32.mrb[9].mxu0 }
 0x2ad   : > { %v649_v10 = vadd.f32 %v794_v33, %v648_v9  ;;  %v879_v11 = vpop.f32.mrb[10].mxu0 }
 0x2ae   : > { %v660_v12 = vadd.f32 %v879_v11, %v794_v33  ;;  %v651_v13 = vpop.f32.mrb[11].mxu0  ;;  %v665_v15 = vmax.f32 %v657_v8, 0.0 }
 0x2af   : > { %v652_v14 = vadd.f32 %v794_v33, %v651_v13  ;;  %v663_v17 = vmax.f32 %v649_v10, 0.0 }
 0x2b0   : > { %v666_v16 = vmax.f32 %v660_v12, 0.0 }
 0x2b1   : > { %v664_v18 = vmax.f32 %v652_v14, 0.0 }
 0x2b2   : > { %v668_v19 = vpack.c.bf16 %v666_v16, %v665_v15 }
 0x2b3   : > { %v667_v20 = vpack.c.bf16 %v664_v18, %v663_v17 }
 0x2b5   : > { %884 = vmatprep.mubr.msk.bf16.mxu1 %vm334_vm0, %v667_v20 }
 0x2b6   : > { %885 = vmatmul.mubr.msk.bf16.vlgmr.msra.gmra.mrb[8].mxu1 %vm334_vm0, %v668_v19 }
 0x389   : > { %v886_v21 = vpop.f32.mrb[8].mxu1 }
 0x38a   : > { %v718_v22 = vadd.f32 %v886_v21, %v795_v62  ;;  %v709_v23 = vpop.f32.mrb[9].mxu1 }
 0x38b   : > { %v710_v24 = vadd.f32 %v795_v62, %v709_v23  ;;  %v887_v25 = vpop.f32.mrb[10].mxu1 }
 0x38c   : > { %726 = vst.msk [vmem:[%s1040_s30 + $0x30] sm:$0xff] %vm536_vm1, %v718_v22  ;;  %v721_v26 = vadd.f32 %v887_v25, %v795_v62  ;;  %v712_v27 = vpop.f32.mrb[11].mxu1 }
 0x38d   : > { %724 = vst.msk [vmem:[%s1040_s30 + $0x20] sm:$0xff] %vm536_vm1, %v710_v24  ;;  %v713_v28 = vadd.f32 %v795_v62, %v712_v27 }
 0x38e   : > { %727 = vst.msk [vmem:[%s1040_s30 + $0x38] sm:$0xff] %vm536_vm1, %v721_v26 }
 0x38f   : > { %725 = vst.msk [vmem:[%s1040_s30 + $0x28] sm:$0xff] %vm536_vm1, %v713_v28 }
 0x390 PF: > { %s17_s24 = sadd.s32 1, %s908_s24  }
 0x391   : > { %p14_p4 = scmp.ge.s32.totalorder %s17_s24, 4  }
 0x393   :  { %16 = sbr.rel (!%p14_p4) target bundleno = 1 (0x1), region = 78 }

</bundles_post_ra>
